<compile_context>
chip_gen: v6e
topology: v6e:2x2x1
jax: 0.10.0
libtpu: 0.0.40
codegen_flags: <defaults>
</compile_context>

<pallas_src>
import functools

import jax
import jax.numpy as jnp
from jax.experimental import pallas as pl
from jax.experimental.pallas import tpu as pltpu


# --------------------------------------------------------------------------
# Kernels
# --------------------------------------------------------------------------
def _small_kernel(x1_ref, x2_ref, o_ref):
    """Whole problem in one VMEM block (tiny shapes, e.g. the module's 3x3)."""
    a = x1_ref[...]
    b = x2_ref[...]
    v1 = jnp.dot(a, b, preferred_element_type=jnp.float32)        # x1 @ x2 (MXU)
    v2 = a + b + v1                                                # VPU
    o_ref[...] = jnp.dot(v2, a, preferred_element_type=jnp.float32).astype(o_ref.dtype)


def _resident_kernel(x1_ref, x2_ref, o_ref, acc_ref, *, tm, tc):
    """Grid step i computes out[i*tm:(i+1)*tm, :] with x1/x2 fully resident.

    Column-chunked body: only (tm, tc) / (tc, n) slabs of intermediates are
    live at a time; the second matmul accumulates into acc_ref chunk by chunk.
    """
    n = x1_ref.shape[0]
    i = pl.program_id(0)
    r = pl.multiple_of(i * tm, tm)              # aligned dynamic row offset
    a_row = x1_ref[pl.ds(r, tm), :]             # (tm, n): needed whole for v1

    acc_ref[...] = jnp.zeros_like(acc_ref)
    for c in range(0, n, tc):                   # static chunk offsets (unrolled)
        x2_col = x2_ref[:, pl.ds(c, tc)]        # (n, tc)
        v1_c = jnp.dot(a_row, x2_col, preferred_element_type=jnp.float32)   # (tm, tc)
        v2_c = (a_row[:, c:c + tc]
                + x2_ref[pl.ds(r, tm), pl.ds(c, tc)]
                + v1_c)                                                      # (tm, tc)
        acc_ref[...] += jnp.dot(v2_c, x1_ref[pl.ds(c, tc), :],
                                preferred_element_type=jnp.float32)          # (tm, n)
    o_ref[...] = acc_ref[...].astype(o_ref.dtype)                 # lane-dense store


def _streamed_kernel(x1_row_ref, x2_col_ref, x1_k_ref, o_ref, acc_ref, *, tm, tk):
    """2-D grid (i, k): stream blocks of x1/x2 instead of keeping them resident.

    x1_row_ref : (tm, n)  = x1[i*tm:(i+1)*tm, :]
    x2_col_ref : (n, tk)  = x2[:, k*tk:(k+1)*tk]
    x1_k_ref   : (tk, n)  = x1[k*tk:(k+1)*tk, :]
    acc_ref accumulates out[i*tm:(i+1)*tm, :] over k (k is the last grid axis).
    """
    i = pl.program_id(0)
    k = pl.program_id(1)

    @pl.when(k == 0)
    def _():
        acc_ref[...] = jnp.zeros_like(acc_ref)

    # v1 block: full contraction for this (row tile, column chunk).
    v1_k = jnp.dot(x1_row_ref[...], x2_col_ref[...],
                   preferred_element_type=jnp.float32)             # (tm, tk)

    r = pl.multiple_of(i * tm, tm)
    c = pl.multiple_of(k * tk, tk)
    v2_k = (x1_row_ref[:, pl.ds(c, tk)]        # x1[i rows, k cols]
            + x2_col_ref[pl.ds(r, tm), :]      # x2[i rows, k cols]
            + v1_k)

    acc_ref[...] += jnp.dot(v2_k, x1_k_ref[...],
                            preferred_element_type=jnp.float32)    # (tm, n)

    @pl.when(k == pl.num_programs(1) - 1)
    def _():
        o_ref[...] = acc_ref[...].astype(o_ref.dtype)


# --------------------------------------------------------------------------
# Wrapper
# --------------------------------------------------------------------------
def _vmem_capacity_bytes() -> int:
    """Per-TensorCore VMEM capacity (128 MiB v5e/v6e, 64 MiB v7x)."""
    try:
        return int(pltpu.get_tpu_info().vmem_capacity_bytes)
    except Exception:
        return 64 << 20          # conservative fallback (v7x per-core VMEM)


def _pad_square(x, n_pad):
    n = x.shape[0]
    if n_pad == n:
        return x
    return jnp.pad(x, ((0, n_pad - n), (0, n_pad - n)))


def model_forward(x1: jax.Array, x2: jax.Array, *, force_streamed: bool = False) -> jax.Array:
    assert x1.shape == x2.shape and x1.ndim == 2 and x1.shape[0] == x1.shape[1], (
        "module semantics require square matrices of identical shape")
    n = x1.shape[0]
    dtype = x1.dtype
    itemsize = jnp.dtype(dtype).itemsize
    cost = pl.CostEstimate(flops=4 * n ** 3, transcendentals=0,
                           bytes_accessed=3 * n * n * itemsize)

    # ---- tiny path ---------------------------------------------------------
    if n < 128:
        return pl.pallas_call(
            _small_kernel,
            out_shape=jax.ShapeDtypeStruct((n, n), dtype),
            in_specs=[pl.BlockSpec((n, n), lambda: (0, 0)),
                      pl.BlockSpec((n, n), lambda: (0, 0))],
            out_specs=pl.BlockSpec((n, n), lambda: (0, 0)),
            cost_estimate=cost,
        )(x1, x2)

    # ---- pad unaligned sizes to a multiple of 128 (exact for this op) ------
    n_pad = ((n + 127) // 128) * 128
    a = _pad_square(x1, n_pad)
    b = _pad_square(x2, n_pad)

    cap = _vmem_capacity_bytes()

    # Row-tile size: largest of (512, 256, 128) dividing n_pad that still
    # yields >= 2 grid tiles (keeps both v7x TensorCores busy).
    cands = [t for t in (512, 256, 128) if n_pad % t == 0]
    multi = [t for t in cands if n_pad // t >= 2]
    tm = (multi or cands)[0]
    # Column-chunk size for the resident body.
    tc = next(t for t in (512, 256, 128) if n_pad % t == 0)

    # VMEM accounting for the resident path (single-buffered inputs).
    resident_bytes = int(
        2 * n_pad * n_pad * itemsize        # x1, x2 resident (Buffered(1))
        + 2 * tm * n_pad * itemsize         # output tile double buffer
        + 2 * tm * n_pad * 4                # acc scratch + hoisted a_row
        + 2 * tc * n_pad * 4                # x2 column chunk + x1 k-row chunk
        + 3 * tm * tc * 4                   # b / v1 / v2 chunk temporaries
        + (8 << 20)                         # Mosaic internal scratch + headroom
    )

    if resident_bytes <= cap and not force_streamed:
        # ---- resident row-tiled path ---------------------------------------
        def resident_call(single_buffer_inputs: bool):
            if single_buffer_inputs:
                in_specs = [
                    pl.BlockSpec((n_pad, n_pad), lambda i: (0, 0),
                                 pipeline_mode=pl.Buffered(1)),
                    pl.BlockSpec((n_pad, n_pad), lambda i: (0, 0),
                                 pipeline_mode=pl.Buffered(1)),
                ]
                budget = resident_bytes
            else:  # conservative fallback: default (double) buffering
                in_specs = [
                    pl.BlockSpec((n_pad, n_pad), lambda i: (0, 0)),
                    pl.BlockSpec((n_pad, n_pad), lambda i: (0, 0)),
                ]
                budget = resident_bytes + 2 * n_pad * n_pad * itemsize
            return pl.pallas_call(
                functools.partial(_resident_kernel, tm=tm, tc=tc),
                out_shape=jax.ShapeDtypeStruct((n_pad, n_pad), dtype),
                grid=(n_pad // tm,),
                in_specs=in_specs,
                out_specs=pl.BlockSpec((tm, n_pad), lambda i: (i, 0)),
                scratch_shapes=[pltpu.VMEM((tm, n_pad), jnp.float32)],
                compiler_params=pltpu.CompilerParams(
                    dimension_semantics=("parallel",),
                    vmem_limit_bytes=int(min(budget, cap)),
                ),
                cost_estimate=cost,
            )(a, b)

        try:
            out = resident_call(True)
        except Exception:
            out = resident_call(False)
    else:
        # ---- streamed path: tile the contraction too ------------------------
        def streamed_bytes(t):
            # 4 double-buffered (t, n)/(n, t) slabs + resident acc + temps.
            return int(9 * t * n_pad * max(itemsize, 4) + 8 * t * t + (8 << 20))

        t = next((t for t in (256, 128)
                  if n_pad % t == 0 and streamed_bytes(t) <= cap), 128)
        out = pl.pallas_call(
            functools.partial(_streamed_kernel, tm=t, tk=t),
            out_shape=jax.ShapeDtypeStruct((n_pad, n_pad), dtype),
            grid=(n_pad // t, n_pad // t),
            in_specs=[
                pl.BlockSpec((t, n_pad), lambda i, k: (i, 0)),   # x1 row slab
                pl.BlockSpec((n_pad, t), lambda i, k: (0, k)),   # x2 col slab
                pl.BlockSpec((t, n_pad), lambda i, k: (k, 0)),   # x1 k-row slab
            ],
            out_specs=pl.BlockSpec((t, n_pad), lambda i, k: (i, 0)),
            scratch_shapes=[pltpu.VMEM((t, n_pad), jnp.float32)],
            compiler_params=pltpu.CompilerParams(
                dimension_semantics=("parallel", "arbitrary"),
                vmem_limit_bytes=int(min(streamed_bytes(t), cap)),
            ),
            cost_estimate=cost,
        )(a, b, a)

    if n_pad != n:
        out = out[:n, :n]
    return out


# --------------------------------------------------------------------------
# Self-test
# --------------------------------------------------------------------------
def _reference(a, b):
    hp = jax.lax.Precision.HIGHEST
    v1 = jnp.dot(a, b, precision=hp)
    return jnp.dot(a + b + v1, a, precision=hp)


def _check(out, ref, tag, rel_tol):
    # Scale-aware check: error is bounded relative to the output magnitude
    # (absolute per-element errors scale with the contraction magnitude, not
    # with each element's own value).
    err = float(jnp.max(jnp.abs(out - ref)))
    scale = max(float(jnp.max(jnp.abs(ref))), 1.0)
    assert err <= rel_tol * scale, (
        f"{tag}: max|err|={err:.3e} exceeds {rel_tol:.1e} * max|ref|={scale:.3e}")


if __name__ == "__main__":
    key = jax.random.PRNGKey(0)
    k1, k2, k3, k4, k5, k6, k7, k8 = jax.random.split(key, 8)

    # 1) Exact module shape (3x3) -> tiny single-block path.
    x1 = jax.random.normal(k1, (3, 3), dtype=jnp.float32)
    x2 = jax.random.normal(k2, (3, 3), dtype=jnp.float32)
    out = jax.block_until_ready(model_forward(x1, x2))
    _check(out, _reference(x1, x2), "small 3x3", 1e-5)

    # 2) Aligned size -> resident row-tiled path (tm=128, grid=(2,)).
    y1 = jax.random.normal(k3, (256, 256), dtype=jnp.float32)
    y2 = jax.random.normal(k4, (256, 256), dtype=jnp.float32)
    out = jax.block_until_ready(model_forward(y1, y2))
    _check(out, _reference(y1, y2), "resident n=256", 1e-3)

    # 3) Unaligned size -> zero-padded to 256, tiled path, output sliced back.
    z1 = jax.random.normal(k5, (200, 200), dtype=jnp.float32)
    z2 = jax.random.normal(k6, (200, 200), dtype=jnp.float32)
    out = jax.block_until_ready(model_forward(z1, z2))
    _check(out, _reference(z1, z2), "padded n=200", 1e-3)

    # 4) Streamed (contraction-tiled) path, exercised at a small size.
    w1 = jax.random.normal(k7, (512, 512), dtype=jnp.float32)
    w2 = jax.random.normal(k8, (512, 512), dtype=jnp.float32)
    out = jax.block_until_ready(model_forward(w1, w2, force_streamed=True))
    _check(out, _reference(w1, w2), "streamed n=512", 1e-3)

    print("KERNEL_OK")
</pallas_src>

<mosaic_0001>
module attributes {stable_mosaic.version = 11 : i64} {
  func.func @_small_kernel(%arg0: memref<3x3xf32, #tpu.memory_space<vmem>>, %arg1: memref<3x3xf32, #tpu.memory_space<vmem>>, %arg2: memref<3x3xf32, #tpu.memory_space<vmem>>) attributes {dimension_semantics = [], scalar_prefetch = 0 : i64, scratch_operands = 0 : i64, tpu.core_type = #tpu.core_type<tc>} {
    %c0 = arith.constant 0 : index
    %c0_0 = arith.constant 0 : index
    %0 = vector.load %arg0[%c0, %c0_0] : memref<3x3xf32, #tpu.memory_space<vmem>>, vector<3x3xf32>
    %c0_1 = arith.constant 0 : index
    %c0_2 = arith.constant 0 : index
    %1 = vector.load %arg1[%c0_1, %c0_2] : memref<3x3xf32, #tpu.memory_space<vmem>>, vector<3x3xf32>
    %cst = arith.constant dense<0.000000e+00> : vector<3x3xf32>
    %2 = tpu.matmul %0, %1, %cst {dimension_numbers = #tpu.dot_dimension_numbers<[1], [0], [0], [1], [0, 0, 1, 1], [], []>} : vector<3x3xf32>, vector<3x3xf32>, vector<3x3xf32> -> vector<3x3xf32>
    %3 = arith.addf %0, %1 : vector<3x3xf32>
    %4 = arith.addf %3, %2 : vector<3x3xf32>
    %cst_3 = arith.constant dense<0.000000e+00> : vector<3x3xf32>
    %5 = tpu.matmul %4, %0, %cst_3 {dimension_numbers = #tpu.dot_dimension_numbers<[1], [0], [0], [1], [0, 0, 1, 1], [], []>} : vector<3x3xf32>, vector<3x3xf32>, vector<3x3xf32> -> vector<3x3xf32>
    %c0_4 = arith.constant 0 : index
    %c0_5 = arith.constant 0 : index
    %6 = vector.load %arg2[%c0_4, %c0_5] : memref<3x3xf32, #tpu.memory_space<vmem>>, vector<3x3xf32>
    tpu.vector_store %arg2[%c0_4, %c0_5], %5 {strides = array<i32>} : memref<3x3xf32, #tpu.memory_space<vmem>>, vector<3x3xf32>,
    return
  }
}

</mosaic_0001>

<bundles_post_ra>
// kernel: tpu_custom_call.1
= control target key start
LH: loop header
LB: loop body
LE: loop exit
PB: predicated region body
PF: predicated region fallthrough
CT: control target
= control target key end

     0   :  { %7 = vsyncpa [#allocation3], 0  ;;  %s329_s0 = inlined_call_operand.hbm [shape: f32[3,3], index: 0, kind: input, shape index: {}]   ;;  %s330_s1 = inlined_call_operand.hbm [shape: f32[3,3], index: 1, kind: input, shape index: {}]   ;;  %s331_s2 = inlined_call_operand.hbm [shape: f32[3,3], index: 2, kind: output, shape index: {}]  }
   0x1   :  { %8 = vsyncpa [#allocation6], 0 }
   0x2   :  { %9 = vsyncpa [#allocation4], 0  ;;  %s300_s9 = smov [#allocation2]   ;;  %s301_s11 = smov [#allocation5]  }
   0x3   :  { %s16_s10 = sshll.u32 %s300_s9, 4  ;;  %s26_s12 = sshll.u32 %s301_s11, 4  ;;  %s17_s10 = int_to_ptr.vmem [resolvable:$true] %s16_s10  ;;  %s27_s12 = int_to_ptr.vmem [resolvable:$true] %s26_s12 }
   0x4   :  { %s242_s13 = scalar_lea.vmem %s17_s10, 64  ;;  %p247_p1 = scmp.lt.s32.totalorder %s17_s10, %s17_s10 }
   0x5   :  { %p243_p0 = scmp.ne.s32.totalorder %s17_s10, %s242_s13  ;;  %p248_p2 = scmp.lt.s32.totalorder %s242_s13, %s242_s13 }
   0x7   :  { %p249_p3 = por %p248_p2, %p247_p1 }
   0x9   :  { %p250_p4 = pnand %p249_p3, %p243_p0 }
   0xb   :  { %253 = shalt.err (!%p250_p4)
}
   0xc   :  { %19 = dma.hbm_to_vmem [thread:$0]  %s329_s0, 64, %s17_s10, [#allocation3]  }
   0xd   :  { %s262_s16 = scalar_lea.vmem %s27_s12, 64  ;;  %p267_p6 = scmp.lt.s32.totalorder %s27_s12, %s27_s12 }
   0xe   :  { %p263_p5 = scmp.ne.s32.totalorder %s27_s12, %s262_s16  ;;  %p268_p7 = scmp.lt.s32.totalorder %s262_s16, %s262_s16 }
  0x10   :  { %p269_p8 = por %p268_p7, %p267_p6 }
  0x12   :  { %p270_p9 = pnand %p269_p8, %p263_p5 }
  0x14   :  { %273 = shalt.err (!%p270_p9)
}
  0x15   :  { %29 = dma.hbm_to_vmem [thread:$0]  %s330_s1, 64, %s27_s12, [#allocation6]  }
  0x16   :  { %294 = dma.done.wait [#allocation3], 64  }
  0x17   :  { %295 = vsyncadd [#allocation3], 4294967232 }
  0x18   :  { %296 = dma.done.wait [#allocation6], 64  }
  0x19   :  { %297 = vsyncadd [#allocation6], 4294967232  ;;  %v302_v0 = vmov 0.0   ;;  %vm303_vm0 = vmmov 0   ;;  %vm42_vm1 = vcmask 1042432   ;;  %vm38_vm2 = vcmask 23552  }
  0x1a   :  { %219 = vmatprep.subr.mxu0 %v302_v0  ;;  %221 = vmatprep.mubr.msk.f32.mxu0 %vm303_vm0, %v302_v0  ;;  %v37_v1 = vld [vmem:[#allocation5] sm:$0x7]  ;;  %v36_v2 = vld [vmem:[#allocation2] sm:$0x7]  ;;  %s304_s0 = smov [#allocation7]   ;;  %vm193_vm3 = vcmask 18432  }
  0x1b   :  { %224 = vmatprep.subr.mxu1 %v302_v0  ;;  %226 = vmatprep.mubr.msk.f32.mxu1 %vm303_vm0, %v302_v0  ;;  %v116_v3 = vadd.f32 %v37_v1, %v36_v2  ;;  %s201_s1 = sshll.u32 %s304_s0, 4  ;;  %s202_s1 = int_to_ptr.vmem [resolvable:$true] %s201_s1 }
  0x1c   :  { %220 = vmatpush3.msk.msra.mxu0 %vm42_vm1, %v37_v1  ;;  %225 = vmatpush3.msk.msra.mxu1 %vm42_vm1, %v36_v2  ;;  %s274_s19 = scalar_lea.vmem %s202_s1, 64  ;;  %p279_p11 = scmp.lt.s32.totalorder %s202_s1, %s202_s1 }
  0x1d   :  { %222 = vmatmul.mubr.msk.f32.vlgmr.msra.gmra.mxu0 %vm38_vm2, %v36_v2  ;;  %p275_p10 = scmp.ne.s32.totalorder %s202_s1, %s274_s19  ;;  %p280_p12 = scmp.lt.s32.totalorder %s274_s19, %s274_s19 }
  0x1f   :  { %p281_p13 = por %p280_p12, %p279_p11 }
  0x21   :  { %p282_p0 = pnand %p281_p13, %p275_p10 }
  0xdd   :  { %v112_v4 = vpop.f32.mrf.mxu0 }
  0xde   :  { %v117_v5 = vadd.f32 %v116_v3, %v112_v4 }
  0xdf   :  { %v223_v6 = vpop.f32.mrf.mxu0 }
  0xe0   :  { %227 = vmatmul.mubr.msk.f32.vlgmr.msra.gmra.mxu1 %vm38_vm2, %v117_v5 }
 0x1a0   :  { %v189_v7 = vpop.f32.mrf.mxu1 }
 0x1a1   :  { %194 = vst.msk [vmem:[#allocation7] sm:$0x7] %vm193_vm3, %v189_v7 }
 0x1a2   :  { %v228_v8 = vpop.f32.mrf.mxu1 }
 0x1a3   :  { %285 = shalt.err (!%p282_p0)
}
 0x1a4   :  { %204 = dma.vmem_to_hbm [thread:$0]  %s202_s1, 64, %s331_s2, [#allocation4]  }
 0x1a5   :  { %298 = dma.done.wait [#allocation4], 64  }
 0x1a6   :  { %299 = vsyncadd [#allocation4], 4294967232 }
 0x1a7   :  { %208 = vsyncpa [#allocation3], 1 }
 0x1a8   :  { %209 = vsyncpa [#allocation6], 1 }
 0x1a9   :  { %210 = vsyncpa [#allocation4], 1 }

</bundles_post_ra>
